<compile_context>
chip_gen: v5e
topology: v5e:2x2
jax: 0.10.0
libtpu: 0.0.40
codegen_flags: <defaults>
</compile_context>

<pallas_src>
import functools
import itertools

import jax
import jax.numpy as jnp
from jax.experimental import pallas as pl
from jax.experimental.pallas import tpu as pltpu


def _round_up(x, mult):
    return ((x + mult - 1) // mult) * mult


def _mtsp_loss_kernel(probs_ref, tw_ref, out_ref, *, starts_weight, m, n, perms):
    """One batch tile of the MTSP assignment loss.

    probs_ref : (M, NN, TB)   probabilities, batch tile on lanes
    tw_ref    : (2M, NN, TB)  [target ; target^T] (flattened), batch on lanes
    out_ref   : (1, 1, TB)    per-batch min-over-permutations loss (lane-dense)
    """
    nn = n * n
    w_starts = jnp.float32(starts_weight / m)
    w_nexts = jnp.float32((1.0 - starts_weight) / (n - 1))
    # Row weight over the flattened (row, col) axis: k = row*n + col, row 0 <=> k < n.
    k_idx = jax.lax.broadcasted_iota(jnp.int32, (nn, 1), 0)
    w = jnp.where(k_idx < n, w_starts, w_nexts)                      # (NN, 1)

    # wmat[i][j]: (1, TB) lane-dense pairwise loss of predicted tour i against
    # target tour j, already min-reduced over {target, target^T}.
    wmat = []
    for i in range(m):
        a_i = -jnp.log(probs_ref[i].astype(jnp.float32)) * w        # (NN, TB)
        row = []
        for j in range(m):
            t0 = tw_ref[j].astype(jnp.float32)                      # target_j
            t1 = tw_ref[j + m].astype(jnp.float32)                  # target_j^T
            l0 = jnp.sum(a_i * t0, axis=0, keepdims=True)           # (1, TB)
            l1 = jnp.sum(a_i * t1, axis=0, keepdims=True)           # (1, TB)
            row.append(jnp.minimum(l0, l1))
        wmat.append(row)

    # Assignment: min over permutations p of sum_j wmat[perm[p, j], j].
    # Statically unrolled (P = m! is tiny for supported m); all lane-dense
    # (1, TB) VPU adds / mins.
    # TODO(synk): for large m (>= ~7) the factorial unroll explodes exactly like
    # the reference module; a streamed-permutation grid axis would be needed.
    loss = None
    for perm in perms:
        s = wmat[perm[0]][0]
        for j in range(1, m):
            s = s + wmat[perm[j]][j]
        loss = s if loss is None else jnp.minimum(loss, s)
    out_ref[...] = loss[None]                                        # (1, 1, TB)


def mtsp_loss(probs, target, dists=None, *, starts_weight=0.5, size_average=True,
              batch_tile=256):
    # `dists` is accepted for API parity with the PyTorch module (unused in fwd).
    del dists
    b, m, n, _ = probs.shape
    nn = n * n

    # Batch tile: multiple of 128 lanes, capped at `batch_tile`.
    tb = min(batch_tile, _round_up(b, 128))
    bp = _round_up(b, tb)
    g = bp // tb

    # Layout plumbing in the wrapper (one pass over the inputs):
    #   probs  -> (M, NN, Bp)
    #   target -> concat(target, target^T) -> (2M, NN, Bp)
    pf = probs.reshape(b, m, nn)
    twf = jnp.concatenate(
        [target, jnp.swapaxes(target, -1, -2)], axis=1).reshape(b, 2 * m, nn)
    if bp != b:
        # pad probs with 1.0 (-log(1)=0) and target with 0 so padded entries
        # contribute loss 0; they are sliced off before the mean anyway.
        pf = jnp.concatenate([pf, jnp.ones((bp - b, m, nn), pf.dtype)], axis=0)
        twf = jnp.concatenate([twf, jnp.zeros((bp - b, 2 * m, nn), twf.dtype)], axis=0)
    pf_t = jnp.transpose(pf, (1, 2, 0))    # (M, NN, Bp)   batch on lanes
    tw_t = jnp.transpose(twf, (1, 2, 0))   # (2M, NN, Bp)

    perms = tuple(itertools.permutations(range(m)))
    kernel = functools.partial(
        _mtsp_loss_kernel, starts_weight=float(starts_weight), m=m, n=n, perms=perms)

    out = pl.pallas_call(
        kernel,
        out_shape=jax.ShapeDtypeStruct((g, 1, tb), jnp.float32),
        grid_spec=pltpu.PrefetchScalarGridSpec(
            num_scalar_prefetch=0,
            grid=(g,),
            in_specs=[
                pl.BlockSpec((m, nn, tb), lambda i: (0, 0, i)),
                pl.BlockSpec((2 * m, nn, tb), lambda i: (0, 0, i)),
            ],
            out_specs=pl.BlockSpec((1, 1, tb), lambda i: (i, 0, 0)),
        ),
        compiler_params=pltpu.CompilerParams(
            dimension_semantics=("parallel",),          # batch tiles -> both TCs (v7x)
            vmem_limit_bytes=32 * 1024 * 1024,          # headroom for 2x double-buffered tiles
        ),
    )(pf_t, tw_t)

    per_batch = out.reshape(g * tb)[:b]
    if size_average:
        return jnp.mean(per_batch)
    return per_batch


def mtsp_loss_ref(probs, target, starts_weight=0.5, size_average=True):
    """Pure-JAX reference that mirrors the PyTorch forward exactly."""
    b, m, n, _ = probs.shape
    target = target.astype(jnp.float32)
    log_probs = jnp.log(probs.astype(jnp.float32))
    stacked_target = jnp.stack((target, jnp.swapaxes(target, 2, 3)), axis=1)  # (b,2,m,n,n)
    all_target = jnp.broadcast_to(stacked_target[:, None], (b, m, 2, m, n, n))
    lp = jnp.broadcast_to(log_probs[:, :, None, None], (b, m, 2, m, n, n))
    losses = -lp * all_target
    starts_losses = losses[:, :, :, :, 0, :].sum(axis=4) / m
    nexts_losses = losses[:, :, :, :, 1:, :].sum(axis=5).sum(axis=4) / (n - 1)
    weighted = starts_losses * starts_weight + nexts_losses * (1.0 - starts_weight)
    weighted = weighted.min(axis=2)                  # (b, m, m)
    perms = jnp.asarray(list(itertools.permutations(range(m))), dtype=jnp.int32)
    gathered = weighted[jnp.arange(b)[:, None, None],
                        perms[None, :, :],
                        jnp.arange(m)[None, None, :]]  # (b, P, m)
    out = gathered.sum(axis=2).min(axis=1)           # (b,)
    if size_average:
        out = out.mean(axis=0)
    return out


if __name__ == "__main__":
    key = jax.random.PRNGKey(0)
    b, m, n = 2, 3, 8
    k1, k2 = jax.random.split(key)

    probs = jax.random.uniform(k1, (b, m, n, n), jnp.float32, minval=0.05, maxval=1.0)
    probs = probs / probs.sum(axis=-1, keepdims=True)            # row-stochastic probs
    target = jax.random.bernoulli(k2, 0.3, (b, m, n, n)).astype(jnp.float32)
    dists = jnp.zeros((b, n, n), jnp.float32)                    # unused by forward

    out = mtsp_loss(probs, target, dists)
    out = jax.block_until_ready(out)

    ref = mtsp_loss_ref(probs, target)
    assert out.shape == () and ref.shape == ()
    assert jnp.allclose(out, ref, rtol=1e-3, atol=1e-5), (out, ref)
    print("KERNEL_OK")
</pallas_src>

<mosaic_0001>
module attributes {stable_mosaic.version = 11 : i64} {
  func.func @_mtsp_loss_kernel(%arg0: i32, %arg1: memref<3x64x128xf32, #tpu.memory_space<vmem>>, %arg2: memref<6x64x128xf32, #tpu.memory_space<vmem>>, %arg3: memref<1x1x128xf32, #tpu.memory_space<vmem>>) attributes {dimension_semantics = [#tpu.dimension_semantics<parallel>], iteration_bounds = array<i64: 1>, scalar_prefetch = 0 : i64, scratch_operands = 0 : i64, tpu.core_type = #tpu.core_type<tc>, window_params = [{transform_indices = @transform_0, window_bounds = array<i64: 3, 64, 128>}, {transform_indices = @transform_1, window_bounds = array<i64: 6, 64, 128>}, {transform_indices = @transform_2, window_bounds = array<i64: 1, 1, 128>}]} {
    %0 = tpu.iota {dimensions = array<i32: 0>} : vector<64x1xi32>
    %c8_i32 = arith.constant 8 : i32
    %1 = vector.broadcast %c8_i32 : i32 to vector<64x1xi32>
    %2 = arith.cmpi slt, %0, %1 : vector<64x1xi32>
    %cst = arith.constant 0.166666672 : f32
    %cst_0 = arith.constant 0.0714285746 : f32
    %3 = vector.broadcast %cst : f32 to vector<64x1xf32>
    %4 = vector.broadcast %cst_0 : f32 to vector<64x1xf32>
    %5 = arith.select %2, %3, %4 : vector<64x1xi1>, vector<64x1xf32>
    %c0 = arith.constant 0 : index
    %c0_1 = arith.constant 0 : index
    %c0_2 = arith.constant 0 : index
    %6 = vector.load %arg1[%c0, %c0_1, %c0_2] : memref<3x64x128xf32, #tpu.memory_space<vmem>>, vector<1x64x128xf32>
    %7 = vector.shape_cast %6 : vector<1x64x128xf32> to vector<64x128xf32>
    %8 = math.log %7 : vector<64x128xf32>
    %cst_3 = arith.constant 0.000000e+00 : f32
    %9 = vector.broadcast %cst_3 : f32 to vector<64x128xf32>
    %10 = arith.subf %9, %8 : vector<64x128xf32>
    %11 = vector.broadcast %5 : vector<64x1xf32> to vector<64x128xf32>
    %12 = arith.mulf %10, %11 : vector<64x128xf32>
    %c0_4 = arith.constant 0 : index
    %c0_5 = arith.constant 0 : index
    %c0_6 = arith.constant 0 : index
    %13 = vector.load %arg2[%c0_4, %c0_5, %c0_6] : memref<6x64x128xf32, #tpu.memory_space<vmem>>, vector<1x64x128xf32>
    %14 = vector.shape_cast %13 : vector<1x64x128xf32> to vector<64x128xf32>
    %c3 = arith.constant 3 : index
    %c0_7 = arith.constant 0 : index
    %c0_8 = arith.constant 0 : index
    %15 = vector.load %arg2[%c3, %c0_7, %c0_8] : memref<6x64x128xf32, #tpu.memory_space<vmem>>, vector<1x64x128xf32>
    %16 = vector.shape_cast %15 : vector<1x64x128xf32> to vector<64x128xf32>
    %17 = arith.mulf %12, %14 : vector<64x128xf32>
    %cst_9 = arith.constant dense<0.000000e+00> : vector<128xf32>
    %18 = vector.multi_reduction <add>, %17, %cst_9 [0] : vector<64x128xf32> to vector<128xf32>
    %19 = vector.shape_cast %18 : vector<128xf32> to vector<1x128xf32>
    %20 = arith.mulf %12, %16 : vector<64x128xf32>
    %cst_10 = arith.constant dense<0.000000e+00> : vector<128xf32>
    %21 = vector.multi_reduction <add>, %20, %cst_10 [0] : vector<64x128xf32> to vector<128xf32>
    %22 = vector.shape_cast %21 : vector<128xf32> to vector<1x128xf32>
    %23 = arith.minimumf %19, %22 : vector<1x128xf32>
    %c1 = arith.constant 1 : index
    %c0_11 = arith.constant 0 : index
    %c0_12 = arith.constant 0 : index
    %24 = vector.load %arg2[%c1, %c0_11, %c0_12] : memref<6x64x128xf32, #tpu.memory_space<vmem>>, vector<1x64x128xf32>
    %25 = vector.shape_cast %24 : vector<1x64x128xf32> to vector<64x128xf32>
    %c4 = arith.constant 4 : index
    %c0_13 = arith.constant 0 : index
    %c0_14 = arith.constant 0 : index
    %26 = vector.load %arg2[%c4, %c0_13, %c0_14] : memref<6x64x128xf32, #tpu.memory_space<vmem>>, vector<1x64x128xf32>
    %27 = vector.shape_cast %26 : vector<1x64x128xf32> to vector<64x128xf32>
    %28 = arith.mulf %12, %25 : vector<64x128xf32>
    %cst_15 = arith.constant dense<0.000000e+00> : vector<128xf32>
    %29 = vector.multi_reduction <add>, %28, %cst_15 [0] : vector<64x128xf32> to vector<128xf32>
    %30 = vector.shape_cast %29 : vector<128xf32> to vector<1x128xf32>
    %31 = arith.mulf %12, %27 : vector<64x128xf32>
    %cst_16 = arith.constant dense<0.000000e+00> : vector<128xf32>
    %32 = vector.multi_reduction <add>, %31, %cst_16 [0] : vector<64x128xf32> to vector<128xf32>
    %33 = vector.shape_cast %32 : vector<128xf32> to vector<1x128xf32>
    %34 = arith.minimumf %30, %33 : vector<1x128xf32>
    %c2 = arith.constant 2 : index
    %c0_17 = arith.constant 0 : index
    %c0_18 = arith.constant 0 : index
    %35 = vector.load %arg2[%c2, %c0_17, %c0_18] : memref<6x64x128xf32, #tpu.memory_space<vmem>>, vector<1x64x128xf32>
    %36 = vector.shape_cast %35 : vector<1x64x128xf32> to vector<64x128xf32>
    %c5 = arith.constant 5 : index
    %c0_19 = arith.constant 0 : index
    %c0_20 = arith.constant 0 : index
    %37 = vector.load %arg2[%c5, %c0_19, %c0_20] : memref<6x64x128xf32, #tpu.memory_space<vmem>>, vector<1x64x128xf32>
    %38 = vector.shape_cast %37 : vector<1x64x128xf32> to vector<64x128xf32>
    %39 = arith.mulf %12, %36 : vector<64x128xf32>
    %cst_21 = arith.constant dense<0.000000e+00> : vector<128xf32>
    %40 = vector.multi_reduction <add>, %39, %cst_21 [0] : vector<64x128xf32> to vector<128xf32>
    %41 = vector.shape_cast %40 : vector<128xf32> to vector<1x128xf32>
    %42 = arith.mulf %12, %38 : vector<64x128xf32>
    %cst_22 = arith.constant dense<0.000000e+00> : vector<128xf32>
    %43 = vector.multi_reduction <add>, %42, %cst_22 [0] : vector<64x128xf32> to vector<128xf32>
    %44 = vector.shape_cast %43 : vector<128xf32> to vector<1x128xf32>
    %45 = arith.minimumf %41, %44 : vector<1x128xf32>
    %c1_23 = arith.constant 1 : index
    %c0_24 = arith.constant 0 : index
    %c0_25 = arith.constant 0 : index
    %46 = vector.load %arg1[%c1_23, %c0_24, %c0_25] : memref<3x64x128xf32, #tpu.memory_space<vmem>>, vector<1x64x128xf32>
    %47 = vector.shape_cast %46 : vector<1x64x128xf32> to vector<64x128xf32>
    %48 = math.log %47 : vector<64x128xf32>
    %cst_26 = arith.constant 0.000000e+00 : f32
    %49 = vector.broadcast %cst_26 : f32 to vector<64x128xf32>
    %50 = arith.subf %49, %48 : vector<64x128xf32>
    %51 = vector.broadcast %5 : vector<64x1xf32> to vector<64x128xf32>
    %52 = arith.mulf %50, %51 : vector<64x128xf32>
    %c0_27 = arith.constant 0 : index
    %c0_28 = arith.constant 0 : index
    %c0_29 = arith.constant 0 : index
    %53 = vector.load %arg2[%c0_27, %c0_28, %c0_29] : memref<6x64x128xf32, #tpu.memory_space<vmem>>, vector<1x64x128xf32>
    %54 = vector.shape_cast %53 : vector<1x64x128xf32> to vector<64x128xf32>
    %c3_30 = arith.constant 3 : index
    %c0_31 = arith.constant 0 : index
    %c0_32 = arith.constant 0 : index
    %55 = vector.load %arg2[%c3_30, %c0_31, %c0_32] : memref<6x64x128xf32, #tpu.memory_space<vmem>>, vector<1x64x128xf32>
    %56 = vector.shape_cast %55 : vector<1x64x128xf32> to vector<64x128xf32>
    %57 = arith.mulf %52, %54 : vector<64x128xf32>
    %cst_33 = arith.constant dense<0.000000e+00> : vector<128xf32>
    %58 = vector.multi_reduction <add>, %57, %cst_33 [0] : vector<64x128xf32> to vector<128xf32>
    %59 = vector.shape_cast %58 : vector<128xf32> to vector<1x128xf32>
    %60 = arith.mulf %52, %56 : vector<64x128xf32>
    %cst_34 = arith.constant dense<0.000000e+00> : vector<128xf32>
    %61 = vector.multi_reduction <add>, %60, %cst_34 [0] : vector<64x128xf32> to vector<128xf32>
    %62 = vector.shape_cast %61 : vector<128xf32> to vector<1x128xf32>
    %63 = arith.minimumf %59, %62 : vector<1x128xf32>
    %c1_35 = arith.constant 1 : index
    %c0_36 = arith.constant 0 : index
    %c0_37 = arith.constant 0 : index
    %64 = vector.load %arg2[%c1_35, %c0_36, %c0_37] : memref<6x64x128xf32, #tpu.memory_space<vmem>>, vector<1x64x128xf32>
    %65 = vector.shape_cast %64 : vector<1x64x128xf32> to vector<64x128xf32>
    %c4_38 = arith.constant 4 : index
    %c0_39 = arith.constant 0 : index
    %c0_40 = arith.constant 0 : index
    %66 = vector.load %arg2[%c4_38, %c0_39, %c0_40] : memref<6x64x128xf32, #tpu.memory_space<vmem>>, vector<1x64x128xf32>
    %67 = vector.shape_cast %66 : vector<1x64x128xf32> to vector<64x128xf32>
    %68 = arith.mulf %52, %65 : vector<64x128xf32>
    %cst_41 = arith.constant dense<0.000000e+00> : vector<128xf32>
    %69 = vector.multi_reduction <add>, %68, %cst_41 [0] : vector<64x128xf32> to vector<128xf32>
    %70 = vector.shape_cast %69 : vector<128xf32> to vector<1x128xf32>
    %71 = arith.mulf %52, %67 : vector<64x128xf32>
    %cst_42 = arith.constant dense<0.000000e+00> : vector<128xf32>
    %72 = vector.multi_reduction <add>, %71, %cst_42 [0] : vector<64x128xf32> to vector<128xf32>
    %73 = vector.shape_cast %72 : vector<128xf32> to vector<1x128xf32>
    %74 = arith.minimumf %70, %73 : vector<1x128xf32>
    %c2_43 = arith.constant 2 : index
    %c0_44 = arith.constant 0 : index
    %c0_45 = arith.constant 0 : index
    %75 = vector.load %arg2[%c2_43, %c0_44, %c0_45] : memref<6x64x128xf32, #tpu.memory_space<vmem>>, vector<1x64x128xf32>
    %76 = vector.shape_cast %75 : vector<1x64x128xf32> to vector<64x128xf32>
    %c5_46 = arith.constant 5 : index
    %c0_47 = arith.constant 0 : index
    %c0_48 = arith.constant 0 : index
    %77 = vector.load %arg2[%c5_46, %c0_47, %c0_48] : memref<6x64x128xf32, #tpu.memory_space<vmem>>, vector<1x64x128xf32>
    %78 = vector.shape_cast %77 : vector<1x64x128xf32> to vector<64x128xf32>
    %79 = arith.mulf %52, %76 : vector<64x128xf32>
    %cst_49 = arith.constant dense<0.000000e+00> : vector<128xf32>
    %80 = vector.multi_reduction <add>, %79, %cst_49 [0] : vector<64x128xf32> to vector<128xf32>
    %81 = vector.shape_cast %80 : vector<128xf32> to vector<1x128xf32>
    %82 = arith.mulf %52, %78 : vector<64x128xf32>
    %cst_50 = arith.constant dense<0.000000e+00> : vector<128xf32>
    %83 = vector.multi_reduction <add>, %82, %cst_50 [0] : vector<64x128xf32> to vector<128xf32>
    %84 = vector.shape_cast %83 : vector<128xf32> to vector<1x128xf32>
    %85 = arith.minimumf %81, %84 : vector<1x128xf32>
    %c2_51 = arith.constant 2 : index
    %c0_52 = arith.constant 0 : index
    %c0_53 = arith.constant 0 : index
    %86 = vector.load %arg1[%c2_51, %c0_52, %c0_53] : memref<3x64x128xf32, #tpu.memory_space<vmem>>, vector<1x64x128xf32>
    %87 = vector.shape_cast %86 : vector<1x64x128xf32> to vector<64x128xf32>
    %88 = math.log %87 : vector<64x128xf32>
    %cst_54 = arith.constant 0.000000e+00 : f32
    %89 = vector.broadcast %cst_54 : f32 to vector<64x128xf32>
    %90 = arith.subf %89, %88 : vector<64x128xf32>
    %91 = vector.broadcast %5 : vector<64x1xf32> to vector<64x128xf32>
    %92 = arith.mulf %90, %91 : vector<64x128xf32>
    %c0_55 = arith.constant 0 : index
    %c0_56 = arith.constant 0 : index
    %c0_57 = arith.constant 0 : index
    %93 = vector.load %arg2[%c0_55, %c0_56, %c0_57] : memref<6x64x128xf32, #tpu.memory_space<vmem>>, vector<1x64x128xf32>
    %94 = vector.shape_cast %93 : vector<1x64x128xf32> to vector<64x128xf32>
    %c3_58 = arith.constant 3 : index
    %c0_59 = arith.constant 0 : index
    %c0_60 = arith.constant 0 : index
    %95 = vector.load %arg2[%c3_58, %c0_59, %c0_60] : memref<6x64x128xf32, #tpu.memory_space<vmem>>, vector<1x64x128xf32>
    %96 = vector.shape_cast %95 : vector<1x64x128xf32> to vector<64x128xf32>
    %97 = arith.mulf %92, %94 : vector<64x128xf32>
    %cst_61 = arith.constant dense<0.000000e+00> : vector<128xf32>
    %98 = vector.multi_reduction <add>, %97, %cst_61 [0] : vector<64x128xf32> to vector<128xf32>
    %99 = vector.shape_cast %98 : vector<128xf32> to vector<1x128xf32>
    %100 = arith.mulf %92, %96 : vector<64x128xf32>
    %cst_62 = arith.constant dense<0.000000e+00> : vector<128xf32>
    %101 = vector.multi_reduction <add>, %100, %cst_62 [0] : vector<64x128xf32> to vector<128xf32>
    %102 = vector.shape_cast %101 : vector<128xf32> to vector<1x128xf32>
    %103 = arith.minimumf %99, %102 : vector<1x128xf32>
    %c1_63 = arith.constant 1 : index
    %c0_64 = arith.constant 0 : index
    %c0_65 = arith.constant 0 : index
    %104 = vector.load %arg2[%c1_63, %c0_64, %c0_65] : memref<6x64x128xf32, #tpu.memory_space<vmem>>, vector<1x64x128xf32>
    %105 = vector.shape_cast %104 : vector<1x64x128xf32> to vector<64x128xf32>
    %c4_66 = arith.constant 4 : index
    %c0_67 = arith.constant 0 : index
    %c0_68 = arith.constant 0 : index
    %106 = vector.load %arg2[%c4_66, %c0_67, %c0_68] : memref<6x64x128xf32, #tpu.memory_space<vmem>>, vector<1x64x128xf32>
    %107 = vector.shape_cast %106 : vector<1x64x128xf32> to vector<64x128xf32>
    %108 = arith.mulf %92, %105 : vector<64x128xf32>
    %cst_69 = arith.constant dense<0.000000e+00> : vector<128xf32>
    %109 = vector.multi_reduction <add>, %108, %cst_69 [0] : vector<64x128xf32> to vector<128xf32>
    %110 = vector.shape_cast %109 : vector<128xf32> to vector<1x128xf32>
    %111 = arith.mulf %92, %107 : vector<64x128xf32>
    %cst_70 = arith.constant dense<0.000000e+00> : vector<128xf32>
    %112 = vector.multi_reduction <add>, %111, %cst_70 [0] : vector<64x128xf32> to vector<128xf32>
    %113 = vector.shape_cast %112 : vector<128xf32> to vector<1x128xf32>
    %114 = arith.minimumf %110, %113 : vector<1x128xf32>
    %c2_71 = arith.constant 2 : index
    %c0_72 = arith.constant 0 : index
    %c0_73 = arith.constant 0 : index
    %115 = vector.load %arg2[%c2_71, %c0_72, %c0_73] : memref<6x64x128xf32, #tpu.memory_space<vmem>>, vector<1x64x128xf32>
    %116 = vector.shape_cast %115 : vector<1x64x128xf32> to vector<64x128xf32>
    %c5_74 = arith.constant 5 : index
    %c0_75 = arith.constant 0 : index
    %c0_76 = arith.constant 0 : index
    %117 = vector.load %arg2[%c5_74, %c0_75, %c0_76] : memref<6x64x128xf32, #tpu.memory_space<vmem>>, vector<1x64x128xf32>
    %118 = vector.shape_cast %117 : vector<1x64x128xf32> to vector<64x128xf32>
    %119 = arith.mulf %92, %116 : vector<64x128xf32>
    %cst_77 = arith.constant dense<0.000000e+00> : vector<128xf32>
    %120 = vector.multi_reduction <add>, %119, %cst_77 [0] : vector<64x128xf32> to vector<128xf32>
    %121 = vector.shape_cast %120 : vector<128xf32> to vector<1x128xf32>
    %122 = arith.mulf %92, %118 : vector<64x128xf32>
    %cst_78 = arith.constant dense<0.000000e+00> : vector<128xf32>
    %123 = vector.multi_reduction <add>, %122, %cst_78 [0] : vector<64x128xf32> to vector<128xf32>
    %124 = vector.shape_cast %123 : vector<128xf32> to vector<1x128xf32>
    %125 = arith.minimumf %121, %124 : vector<1x128xf32>
    %126 = arith.addf %23, %74 : vector<1x128xf32>
    %127 = arith.addf %126, %125 : vector<1x128xf32>
    %128 = arith.addf %23, %114 : vector<1x128xf32>
    %129 = arith.addf %128, %85 : vector<1x128xf32>
    %130 = arith.minimumf %127, %129 : vector<1x128xf32>
    %131 = arith.addf %63, %34 : vector<1x128xf32>
    %132 = arith.addf %131, %125 : vector<1x128xf32>
    %133 = arith.minimumf %130, %132 : vector<1x128xf32>
    %134 = arith.addf %63, %114 : vector<1x128xf32>
    %135 = arith.addf %134, %45 : vector<1x128xf32>
    %136 = arith.minimumf %133, %135 : vector<1x128xf32>
    %137 = arith.addf %103, %34 : vector<1x128xf32>
    %138 = arith.addf %137, %85 : vector<1x128xf32>
    %139 = arith.minimumf %136, %138 : vector<1x128xf32>
    %140 = arith.addf %103, %74 : vector<1x128xf32>
    %141 = arith.addf %140, %45 : vector<1x128xf32>
    %142 = arith.minimumf %139, %141 : vector<1x128xf32>
    %143 = vector.shape_cast %142 : vector<1x128xf32> to vector<1x1x128xf32>
    %c0_79 = arith.constant 0 : index
    %c0_80 = arith.constant 0 : index
    %c0_81 = arith.constant 0 : index
    %144 = vector.load %arg3[%c0_79, %c0_80, %c0_81] : memref<1x1x128xf32, #tpu.memory_space<vmem>>, vector<1x1x128xf32>
    tpu.vector_store %arg3[%c0_79, %c0_80, %c0_81], %143 {strides = array<i32>} : memref<1x1x128xf32, #tpu.memory_space<vmem>>, vector<1x1x128xf32>,
    return
  }
  func.func @transform_0(%arg0: i32) -> (i32, i32, i32) {
    %c0_i32 = arith.constant 0 : i32
    %c0_i32_0 = arith.constant 0 : i32
    %c0_i32_1 = arith.constant 0 : i32
    return %c0_i32, %c0_i32_0, %arg0 : i32, i32, i32
  }
  func.func @transform_1(%arg0: i32) -> (i32, i32, i32) {
    %c0_i32 = arith.constant 0 : i32
    %c0_i32_0 = arith.constant 0 : i32
    %c0_i32_1 = arith.constant 0 : i32
    return %c0_i32, %c0_i32_0, %arg0 : i32, i32, i32
  }
  func.func @transform_2(%arg0: i32) -> (i32, i32, i32) {
    %c0_i32 = arith.constant 0 : i32
    %c0_i32_0 = arith.constant 0 : i32
    %c0_i32_1 = arith.constant 0 : i32
    return %arg0, %c0_i32, %c0_i32_0 : i32, i32, i32
  }
}

</mosaic_0001>

<bundles_post_ra>
// kernel: tpu_custom_call.1
= control target key start
LH: loop header
LB: loop body
LE: loop exit
PB: predicated region body
PF: predicated region fallthrough
CT: control target
= control target key end

     0   :  { %7 = vsyncpa [#allocation3], 0  ;;  %s1319_s0 = inlined_call_operand.hbm [shape: f32[3,64,128], index: 0, kind: input, shape index: {}]   ;;  %s1320_s1 = inlined_call_operand.hbm [shape: f32[6,64,128], index: 1, kind: input, shape index: {}]   ;;  %s1321_s2 = inlined_call_operand.hbm [shape: f32[1,1,128], index: 2, kind: output, shape index: {}]  }
   0x1   :  { %8 = vsyncpa [#allocation6], 0 }
   0x2   :  { %9 = vsyncpa [#allocation4], 0  ;;  %s14_s11 = sshll.u32 %s1319_s0, 4  ;;  %s798_s12 = smov [#allocation2]   ;;  %s15_s11 = int_to_ptr.hbm [resolvable:$true] %s14_s11 }
   0x3   :  { %s16_s13 = sshll.u32 %s798_s12, 4  ;;  %s27_s16 = sshll.u32 %s1320_s1, 4  ;;  %s17_s13 = int_to_ptr.vmem [resolvable:$true] %s16_s13  ;;  %s28_s16 = int_to_ptr.hbm [resolvable:$true] %s27_s16 }
   0x4   :  { %s799_s17 = smov 128   ;;  %s800_s18 = smov 8  }
   0x5   :  { %22 = dma.hbm_to_vmem [thread:$0]  %s15_s11, 3072, %s17_s13, [#allocation3], %s799_s17, %s799_s17, %s800_s18  }
   0x6   :  { %s801_s19 = smov [#allocation5]  }
   0x7   :  { %s29_s20 = sshll.u32 %s801_s19, 4  ;;  %s30_s20 = int_to_ptr.vmem [resolvable:$true] %s29_s20 }
   0x8   :  { %35 = dma.hbm_to_vmem [thread:$0]  %s28_s16, 6144, %s30_s20, [#allocation6], %s799_s17, %s799_s17, %s800_s18  }
   0x9   :  { %792 = dma.done.wait [#allocation3], 3072  }
   0xa   :  { %793 = vsyncadd [#allocation3], 4294964224 }
   0xb   :  { %794 = dma.done.wait [#allocation6], 6144  }
   0xc   :  { %795 = vsyncadd [#allocation6], 4294961152  ;;  %v69_v0 = vld [vmem:[#allocation2] sm:$0xff]  ;;  %v70_v1 = vld [vmem:[#allocation2 + $0x8] sm:$0xff]  ;;  %s802_s0 = smov [#allocation7]   ;;  %s656_s23 = sshll.u32 %s1321_s2, 4  ;;  %s657_s23 = int_to_ptr.hbm [resolvable:$true] %s656_s23 }
   0xd   :  { %v71_v2 = vld [vmem:[#allocation2 + $0x10] sm:$0xff]  ;;  %v72_v3 = vld [vmem:[#allocation2 + $0x18] sm:$0xff]  ;;  %672 = vlog2.f32 %v69_v0  ;;  %v73_v4 = vld [vmem:[#allocation2 + $0x20] sm:$0xff]  ;;  %s654_s1 = sshll.u32 %s802_s0, 4  ;;  %s655_s1 = int_to_ptr.vmem [resolvable:$true] %s654_s1 }
   0xe   :  { %674 = vlog2.f32 %v70_v1  ;;  %v74_v5 = vld [vmem:[#allocation2 + $0x28] sm:$0xff]  ;;  %v75_v6 = vld [vmem:[#allocation2 + $0x30] sm:$0xff]  ;;  %v76_v13 = vld [vmem:[#allocation2 + $0x38] sm:$0xff] }
   0xf   :  { %676 = vlog2.f32 %v71_v2  ;;  %v824_v19 = vld [vmem:[#allocation5] sm:$0xff]  ;;  %v828_v24 = vld [vmem:[#allocation5 + $0x8] sm:$0xff]  ;;  %v832_v27 = vld [vmem:[#allocation5 + $0x10] sm:$0xff] }
  0x10   :  { %678 = vlog2.f32 %v72_v3  ;;  %v842_v35 = vld [vmem:[#allocation5 + $0x18] sm:$0xff]  ;;  %v844_v36 = vld [vmem:[#allocation5 + $0xc0] sm:$0xff]  ;;  %v846_v37 = vld [vmem:[#allocation5 + $0xc8] sm:$0xff] }
  0x11   :  { %680 = vlog2.f32 %v73_v4  ;;  %1372 = vst [vmem:[#allocation11_spill] sm:$0xff] %v842_v35  ;;  %v858_v48 = vld [vmem:[#allocation5 + $0x20] sm:$0xff]  ;;  %v860_v49 = vld [vmem:[#allocation5 + $0xd0] sm:$0xff]  ;;  %v870_v58 = vld [vmem:[#allocation5 + $0x48] sm:$0xff] }
  0x12   :  { %682 = vlog2.f32 %v74_v5  ;;  %1373 = vst [vmem:[#allocation12_spill] sm:$0xff] %v844_v36  ;;  %v868_v57 = vld [vmem:[#allocation5 + $0x40] sm:$0xff]  ;;  %v872_v59 = vld [vmem:[#allocation5 + $0x28] sm:$0xff]  ;;  %v874_v60 = vld [vmem:[#allocation5 + $0xd8] sm:$0xff] }
  0x13   :  { %v673_v7 = vpop.eup %672  ;;  %684 = vlog2.f32 %v75_v6  ;;  %1374 = vst [vmem:[#allocation13_spill] sm:$0xff] %v846_v37  ;;  %v886_v5 = vld [vmem:[#allocation5 + $0x50] sm:$0xff]  ;;  %v888_v6 = vld [vmem:[#allocation5 + $0x100] sm:$0xff] }
  0x14   :  { %v675_v8 = vpop.eup %674  ;;  %v78_v9 = vmul.f32 0.6931472, %v673_v7  ;;  %686 = vlog2.f32 %v76_v13  ;;  %1375 = vst [vmem:[#allocation14_spill] sm:$0xff] %v860_v49  ;;  %v890_v7 = vld [vmem:[#allocation5 + $0x108] sm:$0xff] }
  0x15   :  { %v677_v10 = vpop.eup %676  ;;  %v80_v11 = vmul.f32 0.6931472, %v675_v8  ;;  %v892_v8 = vld [vmem:[#allocation5 + $0x30] sm:$0xff] }
  0x16   :  { %v679_v12 = vpop.eup %678  ;;  %v82_v14 = vmul.f32 0.6931472, %v677_v10  ;;  %v93_v15 = vsub.f32 0.0, %v78_v9  ;;  %v894_v9 = vld [vmem:[#allocation5 + $0xe0] sm:$0xff] }
  0x17   :  { %v681_v16 = vpop.eup %680  ;;  %v84_v17 = vmul.f32 0.6931472, %v679_v12  ;;  %v94_v18 = vsub.f32 0.0, %v80_v11 }
  0x18   :  { %v683_v20 = vpop.eup %682  ;;  %v86_v21 = vmul.f32 0.6931472, %v681_v16  ;;  %v95_v22 = vsub.f32 0.0, %v82_v14  ;;  %v826_v23 = vmul.f32 0.16666667, %v93_v15 }
  0x19   :  { %v96_v25 = vsub.f32 0.0, %v84_v17  ;;  %v830_v26 = vmul.f32 0.071428575, %v94_v18  ;;  %v88_v28 = vmul.f32 0.6931472, %v683_v20  ;;  %v685_v32 = vpop.eup %684  ;;  %v908_v20 = vld [vmem:[#allocation5 + $0x58] sm:$0xff] }
  0x1a   :  { %v97_v29 = vsub.f32 0.0, %v86_v21  ;;  %v834_v30 = vmul.f32 0.071428575, %v95_v22  ;;  %v126_v31 = vmul.f32 %v824_v19, %v826_v23  ;;  %v90_v40 = vmul.f32 0.6931472, %v685_v32  ;;  %v687_v43 = vpop.eup %686  ;;  %v910_v21 = vld [vmem:[#allocation5 + $0x110] sm:$0xff] }
  0x1b   :  { %v838_v33 = vmul.f32 0.071428575, %v96_v25  ;;  %v127_v34 = vmul.f32 %v828_v24, %v830_v26  ;;  %v98_v41 = vsub.f32 0.0, %v88_v28  ;;  %v147_v46 = vmul.f32 %v844_v36, %v826_v23  ;;  %v912_v22 = vld [vmem:[#allocation5 + $0x38] sm:$0xff]  ;;  %v914_v25 = vld [vmem:[#allocation5 + $0xe8] sm:$0xff] }
  0x1c   :  { %v128_v38 = vmul.f32 %v832_v27, %v834_v30  ;;  %v850_v42 = vmul.f32 0.071428575, %v97_v29  ;;  %v148_v47 = vmul.f32 %v846_v37, %v830_v26  ;;  %v92_v50 = vmul.f32 0.6931472, %v687_v43  ;;  %v926_v43 = vld [vmem:[#allocation5 + $0x60] sm:$0xff] }
  0x1d   :  { %v134_v39 = vadd.f32 %v127_v34, %v126_v31  ;;  %v129_v44 = vmul.f32 %v842_v35, %v838_v33  ;;  %v99_v51 = vsub.f32 0.0, %v90_v40  ;;  %v862_v52 = vmul.f32 0.071428575, %v98_v41  ;;  %v920_v34 = vld [vmem:[#allocation5 + $0xf0] sm:$0xff] }
  0x1e   :  { %v130_v53 = vmul.f32 %v858_v48, %v850_v42  ;;  %v149_v55 = vmul.f32 %v860_v49, %v834_v30  ;;  %v155_v56 = vadd.f32 %v148_v47, %v147_v46  ;;  %v187_v61 = vmul.f32 %v868_v57, %v826_v23 }
  0x1f   :  { %v135_v45 = vadd.f32 %v134_v39, %v128_v38  ;;  %v188_v62 = vmul.f32 %v870_v58, %v830_v26  ;;  %v100_v63 = vsub.f32 0.0, %v92_v50  ;;  %v880_v0 = vmul.f32 0.071428575, %v99_v51 }
  0x20   :  { %v131_v1 = vmul.f32 %v872_v59, %v862_v52  ;;  %v150_v3 = vmul.f32 %v874_v60, %v838_v33  ;;  %v156_v4 = vadd.f32 %v155_v56, %v149_v55  ;;  %v189_v10 = vmul.f32 %v886_v5, %v834_v30  ;;  %v293_v55 = vld [vmem:[#allocation2 + $0x48] sm:$0xff] }
  0x21   :  { %v136_v54 = vadd.f32 %v135_v45, %v129_v44  ;;  %v195_v11 = vadd.f32 %v188_v62, %v187_v61  ;;  %v208_v12 = vmul.f32 %v888_v6, %v826_v23  ;;  %v209_v13 = vmul.f32 %v890_v7, %v830_v26  ;;  %v928_v44 = vld [vmem:[#allocation5 + $0x118] sm:$0xff]  ;;  %v292_v45 = vld [vmem:[#allocation2 + $0x40] sm:$0xff]  ;;  %v938_v56 = vld [vmem:[#allocation5 + $0x68] sm:$0xff] }
  0x22   :  { %v902_v14 = vmul.f32 0.071428575, %v100_v63  ;;  %v132_v15 = vmul.f32 %v892_v8, %v880_v0  ;;  %v151_v17 = vmul.f32 %v894_v9, %v850_v42  ;;  %v157_v18 = vadd.f32 %v156_v4, %v150_v3  ;;  %1378 = vst [vmem:[#allocation17_spill] sm:$0xff] %v938_v56  ;;  %v294_v63 = vld [vmem:[#allocation2 + $0x50] sm:$0xff]  ;;  %v295_v4 = vld [vmem:[#allocation2 + $0x58] sm:$0xff] }
  0x23   :  { %v137_v2 = vadd.f32 %v136_v54, %v130_v53  ;;  %v190_v28 = vmul.f32 %v908_v20, %v838_v33  ;;  %v196_v29 = vadd.f32 %v195_v11, %v189_v10  ;;  %v210_v31 = vmul.f32 %v910_v21, %v834_v30  ;;  %v934_v53 = vld [vmem:[#allocation5 + $0x80] sm:$0xff]  ;;  %v936_v54 = vld [vmem:[#allocation5 + $0x88] sm:$0xff]  ;;  %v950_v10 = vld [vmem:[#allocation5 + $0xf8] sm:$0xff] }
  0x24   :  { %v216_v32 = vadd.f32 %v209_v13, %v208_v12  ;;  %v133_v38 = vmul.f32 %v912_v22, %v902_v14  ;;  %v152_v40 = vmul.f32 %v914_v25, %v862_v52  ;;  %v158_v41 = vadd.f32 %v157_v18, %v151_v17  ;;  %1376 = vst [vmem:[#allocation15_spill] sm:$0xff] %v934_v53 }
  0x25   :  { %v138_v16 = vadd.f32 %v137_v2, %v131_v1  ;;  %v191_v46 = vmul.f32 %v926_v43, %v850_v42  ;;  %v197_v47 = vadd.f32 %v196_v29, %v190_v28  ;;  %v211_v50 = vmul.f32 %v928_v44, %v838_v33  ;;  %1377 = vst [vmem:[#allocation16_spill] sm:$0xff] %v936_v54  ;;  %v946_v2 = vld [vmem:[#allocation5 + $0x120] sm:$0xff]  ;;  %v958_v29 = vld [vmem:[#allocation5 + $0x148] sm:$0xff] }
  0x26   :  { %v217_v51 = vadd.f32 %v216_v32, %v210_v31  ;;  %v248_v61 = vmul.f32 %v934_v53, %v826_v23  ;;  %v249_v62 = vmul.f32 %v936_v54, %v830_v26  ;;  %v153_v1 = vmul.f32 %v920_v34, %v880_v0  ;;  %1379 = vst [vmem:[#allocation18_spill] sm:$0xff] %v946_v2  ;;  %v956_v28 = vld [vmem:[#allocation5 + $0x140] sm:$0xff] }
  0x27   :  { %v139_v39 = vadd.f32 %v138_v16, %v132_v15  ;;  %v192_v3 = vmul.f32 %v938_v56, %v862_v52  ;;  %688 = vlog2.f32 %v292_v45  ;;  %1380 = vst [vmem:[#allocation19_spill] sm:$0xff] %v950_v10  ;;  %v159_v12 = vadd.f32 %v158_v41, %v152_v40  ;;  %v954_v15 = vld [vmem:[#allocation5 + $0x90] sm:$0xff]  ;;  %v296_v16 = vld [vmem:[#allocation2 + $0x60] sm:$0xff]  ;;  %v970_v45 = vld [vmem:[#allocation5 + $0x128] sm:$0xff] }
  0x28   :  { %v212_v13 = vmul.f32 %v946_v2, %v850_v42  ;;  %1381 = vst [vmem:[#allocation20_spill] sm:$0xff] %v954_v15  ;;  %690 = vlog2.f32 %v293_v55  ;;  %v198_v17 = vadd.f32 %v197_v47, %v191_v46  ;;  %v218_v18 = vadd.f32 %v217_v51, %v211_v50  ;;  %v968_v41 = vld [vmem:[#allocation5 + $0x70] sm:$0xff]  ;;  %v297_v46 = vld [vmem:[#allocation2 + $0x68] sm:$0xff]  ;;  %v976_v55 = vld [vmem:[#allocation5 + $0x98] sm:$0xff] }
  0x29   :  { %v140_v11 = vadd.f32 %v139_v39, %v133_v38  ;;  %1382 = vst [vmem:[#allocation21_spill] sm:$0xff] %v956_v28  ;;  %v250_v31 = vmul.f32 %v954_v15, %v834_v30  ;;  %692 = vlog2.f32 %v294_v63  ;;  %v256_v32 = vadd.f32 %v249_v62, %v248_v61  ;;  %v996_v56 = vld [vmem:[#allocation5 + $0x158] sm:$0xff] }
  0x2a   :  { %1383 = vst [vmem:[#allocation22_spill] sm:$0xff] %v958_v29  ;;  %v269_v38 = vmul.f32 %v956_v28, %v826_v23  ;;  %v270_v39 = vmul.f32 %v958_v29, %v830_v26  ;;  %694 = vlog2.f32 %v295_v4  ;;  %v154_v40 = vmul.f32 %v950_v10, %v902_v14  ;;  %v978_v26 = vld [vmem:[#allocation5 + $0x150] sm:$0xff] }
  0x2b   :  { %1384 = vst [vmem:[#allocation23_spill] sm:$0xff] %v968_v41  ;;  %696 = vlog2.f32 %v296_v16  ;;  %v141_v47 = vrot.slane %v140_v11, 4  ;;  %v160_v50 = vadd.f32 %v159_v12, %v153_v1  ;;  %v193_v51 = vmul.f32 %v968_v41, %v880_v0  ;;  %v984_v12 = vld [vmem:[#allocation5 + $0x78] sm:$0xff]  ;;  %v986_v41 = vld [vmem:[#allocation5 + $0x130] sm:$0xff] }
  0x2c   :  { %1385 = vst [vmem:[#allocation24_spill] sm:$0xff] %v970_v45  ;;  %v213_v23 = vmul.f32 %v970_v45, %v862_v52  ;;  %v199_v62 = vadd.f32 %v198_v17, %v192_v3  ;;  %v219_v63 = vadd.f32 %v218_v18, %v212_v13  ;;  %v251_v4 = vmul.f32 %v976_v55, %v838_v33  ;;  %v992_v17 = vld [vmem:[#allocation5 + $0xa0] sm:$0xff]  ;;  %v298_v18 = vld [vmem:[#allocation2 + $0x70] sm:$0xff] }
  0x2d   :  { %1386 = vst [vmem:[#allocation25_spill] sm:$0xff] %v976_v55  ;;  %v689_v61 = vpop.eup %688  ;;  %v271_v16 = vmul.f32 %v978_v26, %v834_v30  ;;  %v257_v15 = vadd.f32 %v256_v32, %v250_v31  ;;  %v277_v45 = vadd.f32 %v270_v39, %v269_v38  ;;  %698 = vlog2.f32 %v297_v46 }
  0x2e   :  { %1387 = vst [vmem:[#allocation26_spill] sm:$0xff] %v978_v26  ;;  %v691_v1 = vpop.eup %690  ;;  %v301_v2 = vmul.f32 0.6931472, %v689_v61  ;;  %v194_v3 = vmul.f32 %v984_v12, %v902_v14  ;;  %v214_v13 = vmul.f32 %v986_v41, %v880_v0  ;;  %v994_v26 = vadd.f32 %v141_v47, %v140_v11  ;;  %v1006_v11 = vld [vmem:[#allocation5 + $0xb0] sm:$0xff] }
  0x2f   :  { %1388 = vst [vmem:[#allocation27_spill] sm:$0xff] %v984_v12  ;;  %v693_v29 = vpop.eup %692  ;;  %v303_v30 = vmul.f32 0.6931472, %v691_v1  ;;  %v161_v28 = vadd.f32 %v160_v50, %v154_v40  ;;  %v252_v31 = vmul.f32 %v992_v17, %v850_v42  ;;  %v200_v39 = vadd.f32 %v199_v62, %v193_v51  ;;  %v1002_v12 = vld [vmem:[#allocation5 + $0x138] sm:$0xff]  ;;  %v1004_v1 = vld [vmem:[#allocation5 + $0xa8] sm:$0xff] }
  0x30   :  { %1389 = vst [vmem:[#allocation28_spill] sm:$0xff] %v986_v41  ;;  %v695_v55 = vpop.eup %694  ;;  %v305_v32 = vmul.f32 0.6931472, %v693_v29  ;;  %v220_v46 = vadd.f32 %v219_v63, %v213_v23  ;;  %v272_v61 = vmul.f32 %v996_v56, %v838_v33  ;;  %v258_v40 = vadd.f32 %v257_v15, %v251_v4 }
  0x31   :  { %1390 = vst [vmem:[#allocation29_spill] sm:$0xff] %v992_v17  ;;  %v697_v38 = vpop.eup %696  ;;  %v307_v41 = vmul.f32 0.6931472, %v695_v55  ;;  %v278_v47 = vadd.f32 %v277_v45, %v271_v16  ;;  %700 = vlog2.f32 %v298_v18  ;;  %v316_v50 = vsub.f32 0.0, %v301_v2  ;;  %v1010_v17 = vld [vmem:[#allocation5 + $0xb8] sm:$0xff] }
  0x32   :  { %1391 = vst [vmem:[#allocation30_spill] sm:$0xff] %v996_v56  ;;  %v215_v29 = vmul.f32 %v1002_v12, %v902_v14  ;;  %v253_v51 = vmul.f32 %v1004_v1, %v862_v52  ;;  %v254_v33 = vmul.f32 %v1006_v11, %v880_v0  ;;  %v317_v23 = vsub.f32 0.0, %v303_v30  ;;  %v299_v45 = vld [vmem:[#allocation2 + $0x78] sm:$0xff]  ;;  %v1021_v56 = vld [vmem:[#allocation5 + $0x160] sm:$0xff] }
  0x33   :  { %1392 = vst [vmem:[#allocation31_spill] sm:$0xff] %v1002_v12  ;;  %v699_v55 = vpop.eup %698  ;;  %v162_v62 = vrot.slane %v161_v28, 4  ;;  %v1018_v15 = vmul.f32 %v1010_v17, %v902_v14  ;;  %v309_v2 = vmul.f32 0.6931472, %v697_v38  ;;  %v318_v63 = vsub.f32 0.0, %v305_v32  ;;  %v1023_v12 = vld [vmem:[#allocation5 + $0x168] sm:$0xff] }
  0x34   :  { %1393 = vst [vmem:[#allocation32_spill] sm:$0xff] %v1004_v1  ;;  %v143_v4 = vrot.slane %v994_v26, 2  ;;  %v201_v16 = vadd.f32 %v200_v39, %v194_v3  ;;  %v221_v18 = vadd.f32 %v220_v46, %v214_v13  ;;  %v319_v1 = vsub.f32 0.0, %v307_v41 }
  0x35   :  { %1394 = vst [vmem:[#allocation33_spill] sm:$0xff] %v1006_v11  ;;  %v259_v11 = vadd.f32 %v258_v40, %v252_v31  ;;  %v273_v30 = vmul.f32 %v1021_v56, %v850_v42  ;;  %v279_v10 = vadd.f32 %v278_v47, %v272_v61  ;;  %v1027_v54 = vmul.f32 0.16666667, %v316_v50  ;;  %v1037_v61 = vld [vmem:[#allocation5 + $0x170] sm:$0xff] }
  0x36   :  { %1395 = vst [vmem:[#allocation34_spill] sm:$0xff] %v1010_v17  ;;  %v274_v38 = vmul.f32 %v1023_v12, %v862_v52  ;;  %v311_v32 = vmul.f32 0.6931472, %v699_v55  ;;  %702 = vlog2.f32 %v299_v45  ;;  %v1031_v17 = vmul.f32 0.071428575, %v317_v23 }
  0x37   :  { %1396 = vst [vmem:[#allocation35_spill] sm:$0xff] %v1021_v56  ;;  %v701_v3 = vpop.eup %700  ;;  %v163_v13 = vadd.f32 %v162_v62, %v161_v28  ;;  %v320_v39 = vsub.f32 0.0, %v309_v2  ;;  %v1033_v41 = vmul.f32 0.071428575, %v318_v63  ;;  %v332_v31 = vmul.f32 %v1027_v54, %v824_v19 }
  0x38   :  { %1397 = vst [vmem:[#allocation36_spill] sm:$0xff] %v1023_v12  ;;  %v202_v46 = vrot.slane %v201_v16, 4  ;;  %v222_v42 = vadd.f32 %v221_v18, %v215_v29  ;;  %v1039_v40 = vmul.f32 0.071428575, %v319_v1  ;;  %v333_v52 = vmul.f32 %v1031_v17, %v828_v24 }
  0x39   :  { %v260_v47 = vadd.f32 %v259_v11, %v253_v51  ;;  %v275_v50 = vmul.f32 %v1037_v61, %v880_v0  ;;  %v280_v28 = vadd.f32 %v279_v10, %v273_v30  ;;  %v334_v23 = vmul.f32 %v1033_v41, %v832_v27 }
  0x3a   :  { %v313_v55 = vmul.f32 0.6931472, %v701_v3  ;;  %v321_v62 = vsub.f32 0.0, %v311_v32  ;;  %v335_v29 = vmul.f32 %v1039_v40, %v842_v35  ;;  %v340_v45 = vadd.f32 %v333_v52, %v332_v31  ;;  %v1065_v35 = vld [vmem:[#allocation5 + $0x178] sm:$0xff] }
  0x3b   :  { %v1049_v2 = vmul.f32 0.071428575, %v320_v39  ;;  %v353_v1 = vmul.f32 %v1027_v54, %v844_v36  ;;  %v354_v11 = vmul.f32 %v1031_v17, %v846_v37  ;;  %v355_v0 = vmul.f32 %v1033_v41, %v860_v49 }
  0x3c   :  { %v703_v10 = vpop.eup %702  ;;  %v164_v51 = vrot.slane %v163_v13, 2  ;;  %v203_v63 = vadd.f32 %v202_v46, %v201_v16  ;;  %v223_v18 = vrot.slane %v222_v42, 4  ;;  %v341_v30 = vadd.f32 %v340_v45, %v334_v23 }
  0x3d   :  { %v261_v32 = vadd.f32 %v260_v47, %v254_v33  ;;  %v336_v3 = vmul.f32 %v1049_v2, %v858_v48  ;;  %v356_v39 = vmul.f32 %v1039_v40, %v874_v60  ;;  %v361_v31 = vadd.f32 %v354_v11, %v353_v1 }
  0x3e   :  { %v281_v52 = vadd.f32 %v280_v28, %v274_v38  ;;  %v342_v36 = vadd.f32 %v341_v30, %v335_v29  ;;  %v375_v37 = vmul.f32 %v1027_v54, %v868_v57  ;;  %v376_v49 = vmul.f32 %v1031_v17, %v870_v58 }
  0x3f   :  { %v315_v16 = vmul.f32 0.6931472, %v703_v10  ;;  %v322_v46 = vsub.f32 0.0, %v313_v55  ;;  %v1067_v33 = vmul.f32 0.071428575, %v321_v62  ;;  %v362_v47 = vadd.f32 %v361_v31, %v355_v0 }
  0x40   :  { %v144_v23 = vadd.f32 %v143_v4, %v994_v26  ;;  %v204_v45 = vrot.slane %v203_v63, 2  ;;  %v276_v38 = vmul.f32 %v1065_v35, %v902_v14  ;;  %v343_v29 = vadd.f32 %v342_v36, %v336_v3 }
  0x41   :  { %v337_v28 = vmul.f32 %v1067_v33, %v872_v59  ;;  %v357_v1 = vmul.f32 %v1049_v2, %v894_v9  ;;  %v363_v11 = vadd.f32 %v362_v47, %v356_v39  ;;  %v165_v30 = vadd.f32 %v164_v51, %v163_v13 }
  0x42   :  { %v224_v10 = vadd.f32 %v223_v18, %v222_v42  ;;  %v377_v55 = vmul.f32 %v1033_v41, %v886_v5  ;;  %v383_v62 = vadd.f32 %v376_v49, %v375_v37  ;;  %v262_v26 = vadd.f32 %v261_v32, %v1018_v15 }
  0x43   :  { %v282_v4 = vadd.f32 %v281_v52, %v275_v50  ;;  %v323_v0 = vsub.f32 0.0, %v315_v16  ;;  %v1079_v31 = vmul.f32 0.071428575, %v322_v46  ;;  %v205_v14 = vadd.f32 %v204_v45, %v203_v63 }
  0x44   :  { %v396_v36 = vmul.f32 %v1027_v54, %v888_v6  ;;  %v397_v3 = vmul.f32 %v1031_v17, %v890_v7  ;;  %v344_v42 = vadd.f32 %v343_v29, %v337_v28  ;;  %v358_v37 = vmul.f32 %v1067_v33, %v914_v25 }
  0x45   :  { %v338_v13 = vmul.f32 %v1079_v31, %v892_v8  ;;  %v364_v49 = vadd.f32 %v363_v11, %v357_v1  ;;  %v145_v15 = vrot.slane %v144_v23, 1  ;;  %v166_v50 = vrot.slane %v165_v30, 1 }
  0x46   :  { %v378_v51 = vmul.f32 %v1039_v40, %v908_v20  ;;  %v384_v63 = vadd.f32 %v383_v62, %v377_v55  ;;  %v225_v18 = vrot.slane %v224_v10, 2  ;;  %v263_v32 = vrot.slane %v262_v26, 4 }
  0x47   :  { %v283_v39 = vadd.f32 %v282_v4, %v276_v38  ;;  %v1091_v52 = vmul.f32 0.071428575, %v323_v0  ;;  %v206_v16 = vrot.slane %v205_v14, 1  ;;  %v398_v46 = vmul.f32 %v1033_v41, %v910_v21 }
  0x48   :  { %v404_v47 = vadd.f32 %v397_v3, %v396_v36  ;;  %v345_v28 = vadd.f32 %v344_v42, %v338_v13  ;;  %v359_v29 = vmul.f32 %v1079_v31, %v920_v34  ;;  %v365_v1 = vadd.f32 %v364_v49, %v358_v37  ;;  %v462_v49 = vld [vmem:[#allocation2 + $0x80] sm:$0xff] }
  0x49   :  { %v339_v45 = vmul.f32 %v1091_v52, %v912_v22  ;;  %v1099_v11 = vadd.f32 %v145_v15, %v144_v23  ;;  %v379_v38 = vmul.f32 %v1049_v2, %v926_v43  ;;  %v385_v55 = vadd.f32 %v384_v63, %v378_v51  ;;  %v1402_v23 = vld [vmem:[#allocation16_spill] sm:$0xff]  ;;  %v1405_v51 = vld [vmem:[#allocation17_spill] sm:$0xff] }
  0x4a   :  { %v1103_v62 = vadd.f32 %v166_v50, %v165_v30  ;;  %v1105_v4 = vadd.f32 %v225_v18, %v224_v10  ;;  %v1107_v0 = vadd.f32 %v263_v32, %v262_v26  ;;  %v284_v36 = vrot.slane %v283_v39, 4  ;;  %v1404_v50 = vld [vmem:[#allocation19_spill] sm:$0xff]  ;;  %v1406_v32 = vld [vmem:[#allocation21_spill] sm:$0xff] }
  0x4b   :  { %1398 = vst [vmem:[#allocation37_spill] sm:$0xff] %v1099_v11  ;;  %v399_v3 = vmul.f32 %v1039_v40, %v928_v44  ;;  %v405_v13 = vadd.f32 %v404_v47, %v398_v46  ;;  %v418_v42 = vmul.f32 %v1027_v54, %v934_v53  ;;  %v419_v37 = vmul.f32 %v1031_v17, %v1402_v23  ;;  %v1407_v47 = vld [vmem:[#allocation22_spill] sm:$0xff] }
  0x4c   :  { %1399 = vst [vmem:[#allocation38_spill] sm:$0xff] %v1103_v62  ;;  %v1115_v15 = vadd.f32 %v206_v16, %v205_v14  ;;  %v346_v30 = vadd.f32 %v345_v28, %v339_v45  ;;  %v360_v10 = vmul.f32 %v1091_v52, %v1404_v50  ;;  %v366_v26 = vadd.f32 %v365_v1, %v359_v29  ;;  %v463_v62 = vld [vmem:[#allocation2 + $0x88] sm:$0xff]  ;;  %v1409_v45 = vld [vmem:[#allocation18_spill] sm:$0xff] }
  0x4d   :  { %1400 = vst [vmem:[#allocation39_spill] sm:$0xff] %v1105_v4  ;;  %v380_v63 = vmul.f32 %v1067_v33, %v1405_v51  ;;  %v386_v18 = vadd.f32 %v385_v55, %v379_v38  ;;  %v439_v46 = vmul.f32 %v1027_v54, %v1406_v32  ;;  %v440_v11 = vmul.f32 %v1031_v17, %v1407_v47  ;;  %v1410_v1 = vld [vmem:[#allocation20_spill] sm:$0xff]  ;;  %v1411_v17 = vld [vmem:[#allocation23_spill] sm:$0xff]  ;;  %v465_v23 = vld [vmem:[#allocation2 + $0x98] sm:$0xff] }
  0x4e   :  { %1401 = vst [vmem:[#allocation40_spill] sm:$0xff] %v1107_v0  ;;  %v1127_v16 = vadd.f32 %v284_v36, %v283_v39  ;;  %704 = vlog2.f32 %v462_v49  ;;  %v400_v28 = vmul.f32 %v1049_v2, %v1409_v45  ;;  %v406_v29 = vadd.f32 %v405_v13, %v399_v3  ;;  %v464_v54 = vld [vmem:[#allocation2 + $0x90] sm:$0xff]  ;;  %v1412_v14 = vld [vmem:[#allocation27_spill] sm:$0xff]  ;;  %v1413_v49 = vld [vmem:[#allocation26_spill] sm:$0xff] }
  0x4f   :  { %1403 = vst [vmem:[#allocation41_spill] sm:$0xff] %v1115_v15  ;;  %v420_v38 = vmul.f32 %v1033_v41, %v1410_v1  ;;  %v426_v55 = vadd.f32 %v419_v37, %v418_v42  ;;  %v347_v15 = vrot.slane %v346_v30, 4  ;;  %v367_v32 = vadd.f32 %v366_v26, %v360_v10  ;;  %v466_v13 = vld [vmem:[#allocation2 + $0xa0] sm:$0xff]  ;;  %v1414_v0 = vld [vmem:[#allocation24_spill] sm:$0xff]  ;;  %v1417_v1 = vld [vmem:[#allocation25_spill] sm:$0xff] }
  0x50   :  { %1408 = vst [vmem:[#allocation19_spill] sm:$0xff] %v1127_v16  ;;  %v381_v47 = vmul.f32 %v1079_v31, %v1411_v17  ;;  %706 = vlog2.f32 %v463_v62  ;;  %v382_v39 = vmul.f32 %v1091_v52, %v1412_v14  ;;  %v387_v36 = vadd.f32 %v386_v18, %v380_v63  ;;  %v1415_v37 = vld [vmem:[#allocation28_spill] sm:$0xff]  ;;  %v1416_v26 = vld [vmem:[#allocation31_spill] sm:$0xff]  ;;  %v1419_v45 = vld [vmem:[#allocation30_spill] sm:$0xff] }
  0x51   :  { %v441_v4 = vmul.f32 %v1033_v41, %v1413_v49  ;;  %v447_v3 = vadd.f32 %v440_v11, %v439_v46  ;;  %v401_v42 = vmul.f32 %v1067_v33, %v1414_v0  ;;  %v402_v10 = vmul.f32 %v1079_v31, %v1415_v37  ;;  %v467_v18 = vld [vmem:[#allocation2 + $0xa8] sm:$0xff]  ;;  %v1418_v49 = vld [vmem:[#allocation29_spill] sm:$0xff] }
  0x52   :  { %v403_v16 = vmul.f32 %v1091_v52, %v1416_v26  ;;  %708 = vlog2.f32 %v464_v54  ;;  %v407_v62 = vadd.f32 %v406_v29, %v400_v28  ;;  %v421_v14 = vmul.f32 %v1039_v40, %v1417_v1  ;;  %v468_v28 = vld [vmem:[#allocation2 + $0xb0] sm:$0xff] }
  0x53   :  { %v427_v63 = vadd.f32 %v426_v55, %v420_v38  ;;  %710 = vlog2.f32 %v465_v23  ;;  %v1147_v11 = vadd.f32 %v347_v15, %v346_v30  ;;  %v368_v46 = vrot.slane %v367_v32, 4  ;;  %v1420_v1 = vld [vmem:[#allocation32_spill] sm:$0xff]  ;;  %v1421_v23 = vld [vmem:[#allocation33_spill] sm:$0xff]  ;;  %v1422_v30 = vld [vmem:[#allocation34_spill] sm:$0xff] }
  0x54   :  { %v705_v41 = vpop.eup %704  ;;  %v422_v0 = vmul.f32 %v1049_v2, %v1418_v49  ;;  %712 = vlog2.f32 %v466_v13  ;;  %v388_v37 = vadd.f32 %v387_v36, %v381_v47  ;;  %v442_v26 = vmul.f32 %v1039_v40, %v1419_v45 }
  0x55   :  { %v448_v54 = vadd.f32 %v447_v3, %v441_v4  ;;  %v471_v29 = vmul.f32 0.6931472, %v705_v41  ;;  %v423_v38 = vmul.f32 %v1067_v33, %v1420_v1  ;;  %v1157_v15 = vmul.f32 %v1079_v31, %v1421_v23  ;;  %v469_v4 = vld [vmem:[#allocation2 + $0xb8] sm:$0xff] }
  0x56   :  { %v707_v17 = vpop.eup %706  ;;  %v1161_v55 = vmul.f32 %v1091_v52, %v1422_v30  ;;  %714 = vlog2.f32 %v467_v18  ;;  %v408_v47 = vadd.f32 %v407_v62, %v401_v42  ;;  %v428_v36 = vadd.f32 %v427_v63, %v421_v14 }
  0x57   :  { %v443_v40 = vmul.f32 %v1049_v2, %v1021_v56  ;;  %v473_v3 = vmul.f32 0.6931472, %v707_v17  ;;  %v349_v41 = vrot.slane %v1147_v11, 2  ;;  %v444_v45 = vmul.f32 %v1067_v33, %v1023_v12 }
  0x58   :  { %v709_v13 = vpop.eup %708  ;;  %716 = vlog2.f32 %v468_v28  ;;  %v486_v23 = vsub.f32 0.0, %v471_v29  ;;  %v369_v49 = vadd.f32 %v368_v46, %v367_v32  ;;  %v389_v30 = vadd.f32 %v388_v37, %v382_v39 }
  0x59   :  { %v711_v1 = vpop.eup %710  ;;  %v449_v51 = vadd.f32 %v448_v54, %v442_v26  ;;  %v475_v18 = vmul.f32 0.6931472, %v709_v13  ;;  %718 = vlog2.f32 %v469_v4  ;;  %v487_v62 = vsub.f32 0.0, %v473_v3 }
  0x5a   :  { %v713_v42 = vpop.eup %712  ;;  %v477_v14 = vmul.f32 0.6931472, %v711_v1  ;;  %v1168_v2 = vmul.f32 0.16666667, %v486_v23  ;;  %v409_v17 = vadd.f32 %v408_v47, %v402_v10  ;;  %v429_v63 = vadd.f32 %v428_v36, %v422_v0 }
  0x5b   :  { %v445_v56 = vmul.f32 %v1079_v31, %v1037_v61  ;;  %v479_v53 = vmul.f32 0.6931472, %v713_v42  ;;  %v488_v28 = vsub.f32 0.0, %v475_v18  ;;  %v1172_v12 = vmul.f32 0.071428575, %v487_v62 }
  0x5c   :  { %v715_v33 = vpop.eup %714  ;;  %v489_v29 = vsub.f32 0.0, %v477_v14  ;;  %v502_v32 = vmul.f32 %v1168_v2, %v824_v19  ;;  %v370_v39 = vrot.slane %v369_v49, 2  ;;  %v390_v1 = vrot.slane %v389_v30, 4 }
  0x5d   :  { %v450_v37 = vadd.f32 %v449_v51, %v443_v40  ;;  %v481_v26 = vmul.f32 0.6931472, %v715_v33  ;;  %v490_v54 = vsub.f32 0.0, %v479_v53  ;;  %v1176_v10 = vmul.f32 0.071428575, %v488_v28  ;;  %v1423_v51 = vld [vmem:[#allocation11_spill] sm:$0xff] }
  0x5e   :  { %v717_v46 = vpop.eup %716  ;;  %v1178_v0 = vmul.f32 0.071428575, %v489_v29  ;;  %v503_v31 = vmul.f32 %v1172_v12, %v828_v24  ;;  %v410_v23 = vadd.f32 %v409_v17, %v403_v16  ;;  %v430_v47 = vadd.f32 %v429_v63, %v423_v38  ;;  %v1424_v38 = vld [vmem:[#allocation12_spill] sm:$0xff]  ;;  %v1425_v63 = vld [vmem:[#allocation13_spill] sm:$0xff] }
  0x5f   :  { %v483_v36 = vmul.f32 0.6931472, %v717_v46  ;;  %v491_v4 = vsub.f32 0.0, %v481_v26  ;;  %v719_v3 = vpop.eup %718  ;;  %v1182_v13 = vmul.f32 0.071428575, %v490_v54  ;;  %v504_v19 = vmul.f32 %v1176_v10, %v832_v27  ;;  %v1426_v26 = vld [vmem:[#allocation14_spill] sm:$0xff] }
  0x60   :  { %v505_v53 = vmul.f32 %v1178_v0, %v1423_v51  ;;  %v510_v40 = vadd.f32 %v503_v31, %v502_v32  ;;  %v451_v18 = vadd.f32 %v450_v37, %v444_v45  ;;  %v485_v42 = vmul.f32 0.6931472, %v719_v3 }
  0x61   :  { %v492_v14 = vsub.f32 0.0, %v483_v36  ;;  %v1188_v62 = vmul.f32 0.071428575, %v491_v4  ;;  %v506_v24 = vmul.f32 %v1182_v13, %v858_v48  ;;  %v523_v17 = vmul.f32 %v1168_v2, %v1424_v38 }
  0x62   :  { %v511_v16 = vadd.f32 %v510_v40, %v504_v19  ;;  %v524_v33 = vmul.f32 %v1172_v12, %v1425_v63  ;;  %v1197_v27 = vadd.f32 %v349_v41, %v1147_v11  ;;  %v1199_v28 = vadd.f32 %v390_v1, %v389_v30 }
  0x63   :  { %v411_v45 = vrot.slane %v410_v23, 4  ;;  %v446_v29 = vmul.f32 %v1091_v52, %v1065_v35  ;;  %v1203_v32 = vadd.f32 %v370_v39, %v369_v49  ;;  %v507_v48 = vmul.f32 %v1188_v62, %v872_v59 }
  0x64   :  { %v512_v37 = vadd.f32 %v511_v16, %v505_v53  ;;  %v525_v46 = vmul.f32 %v1176_v10, %v1426_v26  ;;  %v431_v54 = vadd.f32 %v430_v47, %v1157_v15  ;;  %v452_v31 = vadd.f32 %v451_v18, %v445_v56  ;;  %v1428_v16 = vld [vmem:[#allocation17_spill] sm:$0xff] }
  0x65   :  { %v493_v11 = vsub.f32 0.0, %v485_v42  ;;  %v1210_v41 = vmul.f32 0.071428575, %v492_v14  ;;  %v526_v1 = vmul.f32 %v1178_v0, %v874_v60  ;;  %v531_v52 = vadd.f32 %v524_v33, %v523_v17  ;;  %v1429_v17 = vld [vmem:[#allocation16_spill] sm:$0xff] }
  0x66   :  { %v513_v30 = vadd.f32 %v512_v37, %v506_v24  ;;  %v545_v49 = vmul.f32 %v1168_v2, %v868_v57  ;;  %v392_v59 = vrot.slane %v1199_v28, 2  ;;  %v1217_v39 = vadd.f32 %v411_v45, %v410_v23  ;;  %v1431_v45 = vld [vmem:[#allocation18_spill] sm:$0xff] }
  0x67   :  { %v527_v36 = vmul.f32 %v1182_v13, %v894_v9  ;;  %v546_v56 = vmul.f32 %v1172_v12, %v870_v58  ;;  %v508_v15 = vmul.f32 %v1210_v41, %v892_v8  ;;  %v532_v4 = vadd.f32 %v531_v52, %v525_v46  ;;  %v1433_v46 = vld [vmem:[#allocation27_spill] sm:$0xff]  ;;  %v1435_v52 = vld [vmem:[#allocation25_spill] sm:$0xff] }
  0x68   :  { %v514_v47 = vadd.f32 %v513_v30, %v507_v48  ;;  %v547_v60 = vmul.f32 %v1176_v10, %v886_v5  ;;  %v432_v57 = vadd.f32 %v431_v54, %v1161_v55  ;;  %v453_v3 = vadd.f32 %v452_v31, %v446_v29 }
  0x69   :  { %v1228_v19 = vmul.f32 0.071428575, %v493_v11  ;;  %v528_v23 = vmul.f32 %v1188_v62, %v914_v25  ;;  %v533_v9 = vadd.f32 %v532_v4, %v526_v1  ;;  %v548_v58 = vmul.f32 %v1178_v0, %v908_v20  ;;  %v1434_v11 = vld [vmem:[#allocation24_spill] sm:$0xff] }
  0x6a   :  { %v553_v51 = vadd.f32 %v546_v56, %v545_v49  ;;  %v566_v8 = vmul.f32 %v1168_v2, %v888_v6  ;;  %v529_v5 = vmul.f32 %v1210_v41, %v920_v34  ;;  %v567_v55 = vmul.f32 %v1172_v12, %v890_v7  ;;  %v1427_v34 = vld [vmem:[#allocation15_spill] sm:$0xff] }
  0x6b   :  { %v509_v53 = vmul.f32 %v1228_v19, %v912_v22  ;;  %v568_v25 = vmul.f32 %v1176_v10, %v910_v21  ;;  %v515_v40 = vadd.f32 %v514_v47, %v508_v15  ;;  %v534_v18 = vadd.f32 %v533_v9, %v527_v36  ;;  %v1436_v47 = vld [vmem:[#allocation28_spill] sm:$0xff] }
  0x6c   :  { %v549_v20 = vmul.f32 %v1182_v13, %v926_v43  ;;  %v554_v42 = vadd.f32 %v553_v51, %v547_v60  ;;  %v530_v6 = vmul.f32 %v1228_v19, %v1404_v50  ;;  %v569_v22 = vmul.f32 %v1178_v0, %v928_v44  ;;  %v1430_v43 = vld [vmem:[#allocation23_spill] sm:$0xff]  ;;  %v1432_v44 = vld [vmem:[#allocation20_spill] sm:$0xff]  ;;  %v1437_v60 = vld [vmem:[#allocation29_spill] sm:$0xff] }
  0x6d   :  { %v574_v14 = vadd.f32 %v567_v55, %v566_v8  ;;  %v588_v24 = vmul.f32 %v1168_v2, %v1427_v34  ;;  %v535_v7 = vadd.f32 %v534_v18, %v528_v23  ;;  %v550_v21 = vmul.f32 %v1188_v62, %v1428_v16  ;;  %v1438_v51 = vld [vmem:[#allocation21_spill] sm:$0xff]  ;;  %v1440_v18 = vld [vmem:[#allocation31_spill] sm:$0xff]  ;;  %v1442_v34 = vld [vmem:[#allocation26_spill] sm:$0xff] }
  0x6e   :  { %v555_v38 = vadd.f32 %v554_v42, %v548_v58  ;;  %v589_v63 = vmul.f32 %v1172_v12, %v1429_v17  ;;  %v551_v33 = vmul.f32 %v1210_v41, %v1430_v43  ;;  %v570_v50 = vmul.f32 %v1182_v13, %v1431_v45 }
  0x6f   :  { %v575_v29 = vadd.f32 %v574_v14, %v568_v25  ;;  %v590_v48 = vmul.f32 %v1176_v10, %v1432_v44  ;;  %v516_v37 = vadd.f32 %v515_v40, %v509_v53  ;;  %v536_v26 = vadd.f32 %v535_v7, %v529_v5  ;;  %v1439_v53 = vld [vmem:[#allocation22_spill] sm:$0xff] }
  0x70   :  { %v552_v54 = vmul.f32 %v1228_v19, %v1433_v46  ;;  %v556_v31 = vadd.f32 %v555_v38, %v549_v20  ;;  %v571_v30 = vmul.f32 %v1188_v62, %v1434_v11  ;;  %v591_v49 = vmul.f32 %v1178_v0, %v1435_v52  ;;  %v1445_v44 = vld [vmem:[#allocation34_spill] sm:$0xff]  ;;  %v1446_v46 = vld [vmem:[#allocation35_spill] sm:$0xff]  ;;  %v1447_v52 = vld [vmem:[#allocation36_spill] sm:$0xff] }
  0x71   :  { %v576_v1 = vadd.f32 %v575_v29, %v569_v22  ;;  %v596_v36 = vadd.f32 %v589_v63, %v588_v24  ;;  %v537_v56 = vadd.f32 %v536_v26, %v530_v6  ;;  %v572_v4 = vmul.f32 %v1210_v41, %v1436_v47  ;;  %v1441_v6 = vld [vmem:[#allocation32_spill] sm:$0xff]  ;;  %v1444_v63 = vld [vmem:[#allocation30_spill] sm:$0xff] }
  0x72   :  { %v557_v15 = vadd.f32 %v556_v31, %v550_v21  ;;  %v592_v23 = vmul.f32 %v1182_v13, %v1437_v60  ;;  %v609_v8 = vmul.f32 %v1168_v2, %v1438_v51  ;;  %v610_v5 = vmul.f32 %v1172_v12, %v1439_v53  ;;  %v1443_v21 = vld [vmem:[#allocation33_spill] sm:$0xff] }
  0x73   :  { %v577_v9 = vadd.f32 %v576_v1, %v570_v50  ;;  %v597_v58 = vadd.f32 %v596_v36, %v590_v48  ;;  %v433_v55 = vrot.slane %v432_v57, 4  ;;  %v454_v25 = vrot.slane %v453_v3, 4 }
  0x74   :  { %v558_v40 = vadd.f32 %v557_v15, %v551_v33  ;;  %v573_v20 = vmul.f32 %v1228_v19, %v1440_v18  ;;  %v593_v22 = vmul.f32 %v1188_v62, %v1441_v6  ;;  %v611_v24 = vmul.f32 %v1176_v10, %v1442_v34 }
  0x75   :  { %v578_v42 = vadd.f32 %v577_v9, %v571_v30  ;;  %v598_v14 = vadd.f32 %v597_v58, %v591_v49  ;;  %v517_v7 = vrot.slane %v516_v37, 4  ;;  %v538_v16 = vrot.slane %v537_v56, 4 }
  0x76   :  { %v559_v2 = vadd.f32 %v558_v40, %v552_v54  ;;  %v594_v12 = vmul.f32 %v1210_v41, %v1443_v21  ;;  %v612_v43 = vmul.f32 %v1178_v0, %v1444_v63  ;;  %v617_v33 = vadd.f32 %v610_v5, %v609_v8 }
  0x77   :  { %v579_v38 = vadd.f32 %v578_v42, %v572_v4  ;;  %v599_v17 = vadd.f32 %v598_v14, %v592_v23  ;;  %v434_v45 = vadd.f32 %v433_v55, %v432_v57  ;;  %v455_v50 = vadd.f32 %v454_v25, %v453_v3 }
  0x78   :  { %v560_v29 = vrot.slane %v559_v2, 4  ;;  %v595_v48 = vmul.f32 %v1228_v19, %v1445_v44  ;;  %v613_v54 = vmul.f32 %v1182_v13, %v1446_v46  ;;  %v618_v31 = vadd.f32 %v617_v33, %v611_v24 }
  0x79   :  { %v580_v26 = vadd.f32 %v579_v38, %v573_v20  ;;  %v600_v10 = vadd.f32 %v599_v17, %v593_v22  ;;  %v413_v11 = vrot.slane %v1217_v39, 2  ;;  %v518_v30 = vadd.f32 %v517_v7, %v516_v37  ;;  %v1449_v7 = vld [vmem:[#allocation40_spill] sm:$0xff] }
  0x7a   :  { %v561_v1 = vadd.f32 %v560_v29, %v559_v2  ;;  %v614_v0 = vmul.f32 %v1188_v62, %v1447_v52  ;;  %v539_v49 = vadd.f32 %v538_v16, %v537_v56  ;;  %v619_v36 = vadd.f32 %v618_v31, %v612_v43 }
  0x7b   :  { %v581_v57 = vrot.slane %v580_v26, 4  ;;  %v601_v3 = vadd.f32 %v600_v10, %v594_v12  ;;  %v393_v15 = vadd.f32 %v392_v59, %v1199_v28  ;;  %v435_v47 = vrot.slane %v434_v45, 2  ;;  %v1448_v59 = vld [vmem:[#allocation19_spill] sm:$0xff] }
  0x7c   :  { %v456_v4 = vrot.slane %v455_v50, 2  ;;  %v562_v60 = vrot.slane %v561_v1, 2  ;;  %v615_v37 = vmul.f32 %v1210_v41, %v1037_v61  ;;  %v620_v9 = vadd.f32 %v619_v36, %v613_v54 }
  0x7d   :  { %v582_v13 = vadd.f32 %v581_v57, %v580_v26  ;;  %v602_v23 = vadd.f32 %v601_v3, %v595_v48  ;;  %v414_v58 = vadd.f32 %v413_v11, %v1217_v39  ;;  %v519_v62 = vrot.slane %v518_v30, 2  ;;  %v1453_v11 = vld [vmem:[#allocation38_spill] sm:$0xff] }
  0x7e   :  { %v563_v56 = vadd.f32 %v562_v60, %v561_v1  ;;  %v616_v51 = vmul.f32 %v1228_v19, %v1065_v35  ;;  %v540_v8 = vrot.slane %v539_v49, 2  ;;  %v621_v28 = vadd.f32 %v620_v9, %v614_v0 }
  0x7f   :  { %v583_v53 = vrot.slane %v582_v13, 2  ;;  %v603_v5 = vrot.slane %v602_v23, 4  ;;  %v286_v55 = vrot.slane %v1448_v59, 2  ;;  %v351_v25 = vrot.slane %v1197_v27, 1 }
  0x80   :  { %v436_v40 = vadd.f32 %v435_v47, %v434_v45  ;;  %v457_v18 = vadd.f32 %v456_v4, %v455_v50  ;;  %v564_v20 = vrot.slane %v563_v56, 1  ;;  %v622_v42 = vadd.f32 %v621_v28, %v615_v37  ;;  %v1451_v45 = vld [vmem:[#allocation39_spill] sm:$0xff]  ;;  %v1455_v4 = vld [vmem:[#allocation41_spill] sm:$0xff] }
  0x81   :  { %v584_v61 = vadd.f32 %v583_v53, %v582_v13  ;;  %v604_v41 = vadd.f32 %v603_v5, %v602_v23  ;;  %v372_v39 = vrot.slane %v1203_v32, 1  ;;  %v394_v6 = vrot.slane %v393_v15, 1 }
  0x82   :  { %v415_v22 = vrot.slane %v414_v58, 1  ;;  %v520_v14 = vadd.f32 %v519_v62, %v518_v30  ;;  %v541_v35 = vadd.f32 %v540_v8, %v539_v49  ;;  %v623_v24 = vadd.f32 %v622_v42, %v616_v51  ;;  %v1454_v30 = vld [vmem:[#allocation37_spill] sm:$0xff] }
  0x83   :  { %v585_v19 = vrot.slane %v584_v61, 1  ;;  %v605_v34 = vrot.slane %v604_v41, 2  ;;  %v1450_v16 = vrot.slane %v1449_v7, 2  ;;  %v287_v21 = vadd.f32 %v286_v55, %v1448_v59 }
  0x84   :  { %v437_v12 = vrot.slane %v436_v40, 1  ;;  %v458_v38 = vrot.slane %v457_v18, 1  ;;  %v565_v17 = vadd.f32 %v564_v20, %v563_v56  ;;  %v624_v33 = vrot.slane %v623_v24, 4 }
  0x85   :  { %v266_v2 = vadd.f32 %v1450_v16, %v1449_v7  ;;  %v586_v63 = vadd.f32 %v585_v19, %v584_v61  ;;  %v606_v43 = vadd.f32 %v605_v34, %v604_v41  ;;  %v1452_v50 = vrot.slane %v1451_v45, 1 }
  0x86   :  { %v352_v44 = vadd.f32 %v351_v25, %v1197_v27  ;;  %v373_v48 = vadd.f32 %v372_v39, %v1203_v32  ;;  %v395_v26 = vadd.f32 %v394_v6, %v393_v15  ;;  %v416_v10 = vadd.f32 %v415_v22, %v414_v58 }
  0x87   :  { %v228_v29 = vadd.f32 %v1452_v50, %v1451_v45  ;;  %v521_v46 = vrot.slane %v520_v14, 1  ;;  %v542_v54 = vrot.slane %v541_v35, 1  ;;  %v625_v31 = vadd.f32 %v624_v33, %v623_v24 }
  0x88   :  { %v168_v1 = vmin.f32 %v1454_v30, %v1453_v11  ;;  %v267_v52 = vrot.slane %v266_v2, 1  ;;  %v288_v0 = vrot.slane %v287_v21, 1  ;;  %v438_v49 = vadd.f32 %v437_v12, %v436_v40 }
  0x89   :  { %v459_v57 = vadd.f32 %v458_v38, %v457_v18  ;;  %v587_v3 = vmin.f32 %v565_v17, %v586_v63  ;;  %v607_v36 = vrot.slane %v606_v43, 1  ;;  %v626_v47 = vrot.slane %v625_v31, 2 }
  0x8a   :  { %v229_v60 = vmin.f32 %v1455_v4, %v228_v29  ;;  %v374_v27 = vmin.f32 %v352_v44, %v373_v48  ;;  %v417_v13 = vmin.f32 %v395_v26, %v416_v10  ;;  %v522_v32 = vadd.f32 %v521_v46, %v520_v14 }
  0x8b   :  { %v543_v15 = vadd.f32 %v542_v54, %v541_v35  ;;  %v627_v23 = vadd.f32 %v626_v47, %v625_v31  ;;  %v268_v37 = vadd.f32 %v267_v52, %v266_v2  ;;  %v289_v9 = vadd.f32 %v288_v0, %v287_v21 }
  0x8c   :  { %v460_v58 = vmin.f32 %v438_v49, %v459_v57  ;;  %v608_v62 = vadd.f32 %v607_v36, %v606_v43  ;;  %v633_v51 = vadd.f32 %v587_v3, %v168_v1  ;;  %v631_v5 = vadd.f32 %v417_v13, %v168_v1 }
  0x8d   :  { %v628_v56 = vrot.slane %v627_v23, 1  ;;  %v544_v8 = vmin.f32 %v522_v32, %v543_v15  ;;  %v636_v28 = vadd.f32 %v374_v27, %v229_v60  ;;  %v290_v59 = vmin.f32 %v268_v37, %v289_v9 }
  0x8e   :  { %v634_v25 = vadd.f32 %v633_v51, %v460_v58  ;;  %v639_v40 = vadd.f32 %v587_v3, %v374_v27 }
  0x8f   :  { %v629_v53 = vadd.f32 %v628_v56, %v627_v23  ;;  %v642_v61 = vadd.f32 %v544_v8, %v229_v60  ;;  %v645_v39 = vadd.f32 %v544_v8, %v417_v13 }
  0x90   :  { %v640_v42 = vadd.f32 %v639_v40, %v290_v59 }
  0x91   :  { %v630_v55 = vmin.f32 %v608_v62, %v629_v53  ;;  %v643_v22 = vadd.f32 %v642_v61, %v460_v58  ;;  %v646_v35 = vadd.f32 %v645_v39, %v290_v59 }
  0x93   :  { %v632_v18 = vadd.f32 %v631_v5, %v630_v55  ;;  %v637_v20 = vadd.f32 %v636_v28, %v630_v55 }
  0x95   :  { %v635_v41 = vmin.f32 %v632_v18, %v634_v25 }
  0x97   :  { %v638_v6 = vmin.f32 %v635_v41, %v637_v20 }
  0x99   :  { %v641_v14 = vmin.f32 %v638_v6, %v640_v42 }
  0x9b   :  { %v644_v19 = vmin.f32 %v641_v14, %v643_v22 }
  0x9d   :  { %v647_v34 = vmin.f32 %v644_v19, %v646_v35 }
  0x9f   :  { %648 = vst [vmem:[#allocation7] sm:$0x1] %v647_v34 }
  0xa0   :  { %659 = dma.vmem_to_hbm [thread:$0]  %s655_s1, 16, %s657_s23, [#allocation4]  }
  0xa1   :  { %796 = dma.done.wait [#allocation4], 16  }
  0xa2   :  { %797 = vsyncadd [#allocation4], 4294967280 }
  0xa3   :  { %664 = vsyncpa [#allocation3], 1 }
  0xa4   :  { %665 = vsyncpa [#allocation6], 1 }
  0xa5   :  { %666 = vsyncpa [#allocation4], 1 }

</bundles_post_ra>
